<compile_context>
chip_gen: v5e
topology: v5e:2x2
jax: 0.10.0
libtpu: 0.0.40
codegen_flags: <defaults>
</compile_context>

<pallas_src>
import functools

import jax
import jax.numpy as jnp
from jax.experimental import pallas as pl
from jax.experimental.pallas import tpu as pltpu


def _round_up(n: int, m: int) -> int:
    return ((n + m - 1) // m) * m


def _sigmoid(x):
    # One EUP tanh push instead of exp + reciprocal.
    return 0.5 * (jnp.tanh(0.5 * x) + 1.0)


def elm_gd_kernel(x_ref, w1_ref, b1_ref, w2_ref, b2_ref, out_ref):
    # x_ref:  (TB, In)   bf16      w1_ref: (In, Hp)  bf16   b1_ref: (1, Hp)  f32
    # w2_ref: (Hp, Outp) bf16      b2_ref: (1, Outp) f32    out_ref: (TB, Outp) f32
    x = x_ref[...]

    # Hidden layer: sigmoid(x @ W1 + b1); MXU in bf16, accumulate + epilogue in f32.
    h = jnp.dot(x, w1_ref[...], preferred_element_type=jnp.float32)
    h = _sigmoid(h + b1_ref[...])

    # Output layer: sigmoid(h @ W2 + b2); feed the MXU bf16 operands again.
    h = h.astype(w2_ref.dtype)
    o = jnp.dot(h, w2_ref[...], preferred_element_type=jnp.float32)
    out_ref[...] = _sigmoid(o + b2_ref[...]).astype(out_ref.dtype)


@functools.partial(jax.jit, static_argnames=("block_b",))
def elm_gd_forward(x, w1, b1, w2, b2, *, block_b=512):
    """Forward pass.

    x:  (B, In) float32         w1: (In, H) float32   b1: (H,) or (1, H) float32
    w2: (H, Out) float32        b2: (Out,) or (1, Out) float32
    Returns (B, Out) float32.
    Weights are stored pre-transposed as (in_features, out_features).
    """
    B, In = x.shape
    H = w1.shape[1]
    Out = w2.shape[1]

    b1 = b1.reshape(1, H).astype(jnp.float32)
    b2 = b2.reshape(1, Out).astype(jnp.float32)

    # Lane-dense padding of the feature axes (multiples of 128).
    Hp = _round_up(H, 128)
    Outp = _round_up(Out, 128)

    # Batch tile: multiple of 8 sublanes, capped so the double-buffered x/out tiles
    # plus the resident weights stay far inside even v7x's 32 MiB scoped VMEM default.
    TB = max(8, min(block_b, _round_up(B, 8)))
    Bp = _round_up(B, TB)

    # Zero-pad.  Padded hidden columns get zero weight rows in W2, so their sigmoid(0)=0.5
    # activations contribute nothing; padded batch rows / output columns are sliced off.
    x_p = jnp.zeros((Bp, In), jnp.bfloat16).at[:B, :].set(x.astype(jnp.bfloat16))
    w1_p = jnp.zeros((In, Hp), jnp.bfloat16).at[:, :H].set(w1.astype(jnp.bfloat16))
    b1_p = jnp.zeros((1, Hp), jnp.float32).at[:, :H].set(b1)
    w2_p = jnp.zeros((Hp, Outp), jnp.bfloat16).at[:H, :Out].set(w2.astype(jnp.bfloat16))
    b2_p = jnp.zeros((1, Outp), jnp.float32).at[:, :Out].set(b2)

    grid = (Bp // TB,)

    cost = pl.CostEstimate(
        flops=2 * Bp * (In * Hp + Hp * Outp),
        transcendentals=Bp * (Hp + Outp),
        bytes_accessed=(x_p.size * 2 + w1_p.size * 2 + b1_p.size * 4
                        + w2_p.size * 2 + b2_p.size * 4 + Bp * Outp * 4),
    )

    out_p = pl.pallas_call(
        elm_gd_kernel,
        out_shape=jax.ShapeDtypeStruct((Bp, Outp), jnp.float32),
        grid=grid,
        in_specs=[
            pl.BlockSpec((TB, In), lambda i: (i, 0)),    # x: tiled along batch
            pl.BlockSpec((In, Hp), lambda i: (0, 0)),    # w1: resident
            pl.BlockSpec((1, Hp), lambda i: (0, 0)),     # b1: resident
            pl.BlockSpec((Hp, Outp), lambda i: (0, 0)),  # w2: resident
            pl.BlockSpec((1, Outp), lambda i: (0, 0)),   # b2: resident
        ],
        out_specs=pl.BlockSpec((TB, Outp), lambda i: (i, 0)),
        compiler_params=pltpu.CompilerParams(
            dimension_semantics=("parallel",),
        ),
        cost_estimate=cost,
    )(x_p, w1_p, b1_p, w2_p, b2_p)

    return out_p[:B, :Out]


def init_params(key, input_size, hidden_size, output_size):
    """Deterministic init mimicking nn.Linear's uniform(-1/sqrt(fan_in), 1/sqrt(fan_in))."""
    k1, k2, k3, k4 = jax.random.split(key, 4)
    bound1 = 1.0 / jnp.sqrt(input_size)
    bound2 = 1.0 / jnp.sqrt(hidden_size)
    # Stored as (in, out) = transpose of PyTorch's (out, in) weight layout.
    w1 = jax.random.uniform(k1, (input_size, hidden_size), jnp.float32, -bound1, bound1)
    b1 = jax.random.uniform(k2, (1, hidden_size), jnp.float32, -bound1, bound1)
    w2 = jax.random.uniform(k3, (hidden_size, output_size), jnp.float32, -bound2, bound2)
    b2 = jax.random.uniform(k4, (1, output_size), jnp.float32, -bound2, bound2)
    return w1, b1, w2, b2


if __name__ == "__main__":
    # Small shapes consistent with the module's forward: x is (batch, input_size).
    batch, input_size, hidden_size, output_size = 8, 16, 32, 8

    key = jax.random.PRNGKey(0)
    kx, kp = jax.random.split(key)
    x = jax.random.normal(kx, (batch, input_size), jnp.float32)
    w1, b1, w2, b2 = init_params(kp, input_size, hidden_size, output_size)

    out = elm_gd_forward(x, w1, b1, w2, b2)
    out = jax.block_until_ready(out)
    assert out.shape == (batch, output_size)

    # Reference 1: mirror the kernel's bf16 operand rounding (tight tolerance).
    xb = x.astype(jnp.bfloat16).astype(jnp.float32)
    w1b = w1.astype(jnp.bfloat16).astype(jnp.float32)
    w2b = w2.astype(jnp.bfloat16).astype(jnp.float32)
    h_ref = jax.nn.sigmoid(xb @ w1b + b1)
    h_ref = h_ref.astype(jnp.bfloat16).astype(jnp.float32)
    ref_exact = jax.nn.sigmoid(h_ref @ w2b + b2)
    assert jnp.allclose(out, ref_exact, atol=2e-3, rtol=2e-3)

    # Reference 2: pure-f32 PyTorch semantics (loose tolerance for bf16 operands).
    ref_f32 = jax.nn.sigmoid(jax.nn.sigmoid(x @ w1 + b1) @ w2 + b2)
    assert jnp.allclose(out, ref_f32, atol=3e-2, rtol=3e-2)

    print("KERNEL_OK")
</pallas_src>

<mosaic_0001>
module attributes {stable_mosaic.version = 11 : i64} {
  func.func @elm_gd_kernel(%arg0: i32, %arg1: memref<8x16xbf16, #tpu.memory_space<vmem>>, %arg2: memref<16x128xbf16, #tpu.memory_space<vmem>>, %arg3: memref<1x128xf32, #tpu.memory_space<vmem>>, %arg4: memref<128x128xbf16, #tpu.memory_space<vmem>>, %arg5: memref<1x128xf32, #tpu.memory_space<vmem>>, %arg6: memref<8x128xf32, #tpu.memory_space<vmem>>) attributes {dimension_semantics = [#tpu.dimension_semantics<parallel>], iteration_bounds = array<i64: 1>, scalar_prefetch = 0 : i64, scratch_operands = 0 : i64, tpu.core_type = #tpu.core_type<tc>, window_params = [{transform_indices = @transform_0, window_bounds = array<i64: 8, 16>}, {pipeline_mode = #tpu.pipeline_mode<synchronous>, transform_indices = @transform_1, window_bounds = array<i64: 16, 128>}, {pipeline_mode = #tpu.pipeline_mode<synchronous>, transform_indices = @transform_2, window_bounds = array<i64: 1, 128>}, {pipeline_mode = #tpu.pipeline_mode<synchronous>, transform_indices = @transform_3, window_bounds = array<i64: 128, 128>}, {pipeline_mode = #tpu.pipeline_mode<synchronous>, transform_indices = @transform_4, window_bounds = array<i64: 1, 128>}, {transform_indices = @transform_5, window_bounds = array<i64: 8, 128>}]} {
    %c0 = arith.constant 0 : index
    %c0_0 = arith.constant 0 : index
    %0 = vector.load %arg1[%c0, %c0_0] : memref<8x16xbf16, #tpu.memory_space<vmem>>, vector<8x16xbf16>
    %c0_1 = arith.constant 0 : index
    %c0_2 = arith.constant 0 : index
    %1 = vector.load %arg2[%c0_1, %c0_2] : memref<16x128xbf16, #tpu.memory_space<vmem>>, vector<16x128xbf16>
    %cst = arith.constant dense<0.000000e+00> : vector<8x128xf32>
    %2 = tpu.matmul %0, %1, %cst {dimension_numbers = #tpu.dot_dimension_numbers<[1], [0], [0], [1], [0, 0, 1, 1], [], []>} : vector<8x16xbf16>, vector<16x128xbf16>, vector<8x128xf32> -> vector<8x128xf32>
    %c0_3 = arith.constant 0 : index
    %c0_4 = arith.constant 0 : index
    %3 = vector.load %arg3[%c0_3, %c0_4] : memref<1x128xf32, #tpu.memory_space<vmem>>, vector<1x128xf32>
    %4 = vector.broadcast %3 : vector<1x128xf32> to vector<8x128xf32>
    %5 = arith.addf %2, %4 : vector<8x128xf32>
    %cst_5 = arith.constant 5.000000e-01 : f32
    %6 = vector.broadcast %cst_5 : f32 to vector<8x128xf32>
    %7 = arith.mulf %6, %5 : vector<8x128xf32>
    %8 = math.tanh %7 : vector<8x128xf32>
    %cst_6 = arith.constant 1.000000e+00 : f32
    %9 = vector.broadcast %cst_6 : f32 to vector<8x128xf32>
    %10 = arith.addf %8, %9 : vector<8x128xf32>
    %cst_7 = arith.constant 5.000000e-01 : f32
    %11 = vector.broadcast %cst_7 : f32 to vector<8x128xf32>
    %12 = arith.mulf %11, %10 : vector<8x128xf32>
    %13 = arith.truncf %12 : vector<8x128xf32> to vector<8x128xbf16>
    %c0_8 = arith.constant 0 : index
    %c0_9 = arith.constant 0 : index
    %14 = vector.load %arg4[%c0_8, %c0_9] : memref<128x128xbf16, #tpu.memory_space<vmem>>, vector<128x128xbf16>
    %cst_10 = arith.constant dense<0.000000e+00> : vector<8x128xf32>
    %15 = tpu.matmul %13, %14, %cst_10 {dimension_numbers = #tpu.dot_dimension_numbers<[1], [0], [0], [1], [0, 0, 1, 1], [], []>} : vector<8x128xbf16>, vector<128x128xbf16>, vector<8x128xf32> -> vector<8x128xf32>
    %c0_11 = arith.constant 0 : index
    %c0_12 = arith.constant 0 : index
    %16 = vector.load %arg5[%c0_11, %c0_12] : memref<1x128xf32, #tpu.memory_space<vmem>>, vector<1x128xf32>
    %17 = vector.broadcast %16 : vector<1x128xf32> to vector<8x128xf32>
    %18 = arith.addf %15, %17 : vector<8x128xf32>
    %cst_13 = arith.constant 5.000000e-01 : f32
    %19 = vector.broadcast %cst_13 : f32 to vector<8x128xf32>
    %20 = arith.mulf %19, %18 : vector<8x128xf32>
    %21 = math.tanh %20 : vector<8x128xf32>
    %cst_14 = arith.constant 1.000000e+00 : f32
    %22 = vector.broadcast %cst_14 : f32 to vector<8x128xf32>
    %23 = arith.addf %21, %22 : vector<8x128xf32>
    %cst_15 = arith.constant 5.000000e-01 : f32
    %24 = vector.broadcast %cst_15 : f32 to vector<8x128xf32>
    %25 = arith.mulf %24, %23 : vector<8x128xf32>
    %c0_16 = arith.constant 0 : index
    %c0_17 = arith.constant 0 : index
    %26 = vector.load %arg6[%c0_16, %c0_17] : memref<8x128xf32, #tpu.memory_space<vmem>>, vector<8x128xf32>
    tpu.vector_store %arg6[%c0_16, %c0_17], %25 {strides = array<i32>} : memref<8x128xf32, #tpu.memory_space<vmem>>, vector<8x128xf32>,
    return
  }
  func.func @transform_0(%arg0: i32) -> (i32, i32) {
    %c0_i32 = arith.constant 0 : i32
    %c0_i32_0 = arith.constant 0 : i32
    return %arg0, %c0_i32 : i32, i32
  }
  func.func @transform_1(%arg0: i32) -> (i32, i32) {
    %c0_i32 = arith.constant 0 : i32
    %c0_i32_0 = arith.constant 0 : i32
    %c0_i32_1 = arith.constant 0 : i32
    return %c0_i32, %c0_i32_0 : i32, i32
  }
  func.func @transform_2(%arg0: i32) -> (i32, i32) {
    %c0_i32 = arith.constant 0 : i32
    %c0_i32_0 = arith.constant 0 : i32
    %c0_i32_1 = arith.constant 0 : i32
    return %c0_i32, %c0_i32_0 : i32, i32
  }
  func.func @transform_3(%arg0: i32) -> (i32, i32) {
    %c0_i32 = arith.constant 0 : i32
    %c0_i32_0 = arith.constant 0 : i32
    %c0_i32_1 = arith.constant 0 : i32
    return %c0_i32, %c0_i32_0 : i32, i32
  }
  func.func @transform_4(%arg0: i32) -> (i32, i32) {
    %c0_i32 = arith.constant 0 : i32
    %c0_i32_0 = arith.constant 0 : i32
    %c0_i32_1 = arith.constant 0 : i32
    return %c0_i32, %c0_i32_0 : i32, i32
  }
  func.func @transform_5(%arg0: i32) -> (i32, i32) {
    %c0_i32 = arith.constant 0 : i32
    %c0_i32_0 = arith.constant 0 : i32
    return %arg0, %c0_i32 : i32, i32
  }
}

</mosaic_0001>

<bundles_post_ra>
// kernel: elm_gd_forward.1
= control target key start
LH: loop header
LB: loop body
LE: loop exit
PB: predicated region body
PF: predicated region fallthrough
CT: control target
= control target key end

     0   :  { %vm35_vm0 = vcmask 130048   ;;  %s308_s0 = inlined_call_operand.vmem [shape: bf16[8,16], index: 0, kind: input, shape index: {}]   ;;  %s309_s1 = inlined_call_operand.vmem [shape: bf16[16,128], index: 1, kind: input, shape index: {}]   ;;  %s310_s2 = inlined_call_operand.vmem [shape: f32[1,128], index: 2, kind: input, shape index: {}]   ;;  %s311_s3 = inlined_call_operand.vmem [shape: bf16[128,128], index: 3, kind: input, shape index: {}]   ;;  %s312_s4 = inlined_call_operand.vmem [shape: f32[1,128], index: 4, kind: input, shape index: {}]   ;;  %s313_s5 = inlined_call_operand.hbm [shape: f32[8,128], index: 5, kind: output, shape index: {}]  }
   0x1   :  { %v196_v0 = vld [vmem:[%s309_s1] sm:$0xff]  ;;  %v204_v1 = vld [vmem:[%s311_s3 + $0x38] sm:$0xff]  ;;  %v203_v3 = vld [vmem:[%s311_s3 + $0x30] sm:$0xff] }
   0x2   :  { %v22_v2 = vld [vmem:[%s308_s0] sm:$0xf]  ;;  %46 = vmatpush.bf16.msra.mxu0 %v196_v0  ;;  %125 = vmatpush.bf16.msra.mxu1 %v204_v1 }
   0x3   :  { %10 = vsyncpa [#allocation3], 0  ;;  %v202_v4 = vld [vmem:[%s311_s3 + $0x28] sm:$0xff]  ;;  %v201_v5 = vld [vmem:[%s311_s3 + $0x20] sm:$0xff]  ;;  %s150_s17 = sshll.u32 %s313_s5, 4  ;;  %s151_s17 = int_to_ptr.hbm [resolvable:$true] %s150_s17 }
   0x4   :  { %v200_v6 = vld [vmem:[%s311_s3 + $0x18] sm:$0xff]  ;;  %v199_v7 = vld [vmem:[%s311_s3 + $0x10] sm:$0xff]  ;;  %v198_v8 = vld [vmem:[%s311_s3 + $0x8] sm:$0xff] }
   0x5   :  { %163 = vmatmul.msk.bf16.vlgmr.msra.gmra.mxu0 %vm35_vm0, %v22_v2  ;;  %v197_v9 = vld [vmem:[%s311_s3] sm:$0xff] }
   0x6   :  { %126 = vmatpush.bf16.msra.mxu1 %v203_v3  ;;  %v206_v10 = vld [vmem:[%s310_s2] ss:$0 sm:$0xff]  ;;  %s238_s2 = smov [#allocation2]  }
   0x7   :  { %v207_v19 = vld [vmem:[%s312_s4] ss:$0 sm:$0xff]  ;;  %s148_s3 = sshll.u32 %s238_s2, 4  ;;  %s149_s3 = int_to_ptr.vmem [resolvable:$true] %s148_s3 }
   0xa   :  { %127 = vmatpush.bf16.msra.mxu1 %v202_v4 }
   0xe   :  { %128 = vmatpush.bf16.msra.mxu1 %v201_v5 }
  0x12   :  { %129 = vmatpush.bf16.msra.mxu1 %v200_v6 }
  0x16   :  { %130 = vmatpush.bf16.msra.mxu1 %v199_v7 }
  0x1a   :  { %131 = vmatpush.bf16.msra.mxu1 %v198_v8 }
  0x1e   :  { %132 = vmatpush.bf16.msra.mxu1 %v197_v9 }
  0x82   :  { %v48_v11 = vpop.f32.mrf.mxu0 }
  0x83   :  { %v49_v12 = vadd.f32 %v206_v10, %v48_v11 }
  0x85   :  { %v52_v13 = vmul.f32 0.5, %v49_v12 }
  0x87   :  { %208 = vtanh.f32 %v52_v13 }
  0x8a   :  { %v50_v14 = vpop.f32.mrf.mxu0 }
  0x8d   :  { %v209_v15 = vpop.eup %208 }
  0x8e   :  { %v54_v16 = vadd.f32 1.0, %v209_v15 }
  0x90   :  { %v55_v17 = vmul.f32 0.5, %v54_v16 }
  0x92   :  { %v56_v18 = vpack.c.bf16 %v55_v17, %v55_v17 }
  0x94   :  { %133 = vmatmul.bf16.vlgmr.msra.gmra.mxu1 %v56_v18 }
 0x111   :  { %v134_v20 = vpop.f32.mrf.mxu1 }
 0x112   :  { %v135_v21 = vadd.f32 %v207_v19, %v134_v20 }
 0x114   :  { %v138_v22 = vmul.f32 0.5, %v135_v21 }
 0x116   :  { %210 = vtanh.f32 %v138_v22 }
 0x119   :  { %v136_v23 = vpop.f32.mrf.mxu1 }
 0x11c   :  { %v211_v24 = vpop.eup %210 }
 0x11d   :  { %v140_v25 = vadd.f32 1.0, %v211_v24 }
 0x11f   :  { %v141_v26 = vmul.f32 0.5, %v140_v25 }
 0x121   :  { %142 = vst [vmem:[#allocation2] sm:$0xff] %v141_v26 }
 0x122   :  { %153 = dma.vmem_to_hbm [thread:$0]  %s149_s3, 128, %s151_s17, [#allocation3]  }
 0x123   :  { %236 = dma.done.wait [#allocation3], 128  }
 0x124   :  { %237 = vsyncadd [#allocation3], 4294967168 }
 0x125   :  { %158 = vsyncpa [#allocation3], 1 }

</bundles_post_ra>
